<compile_context>
chip_gen: v5e
topology: v5e:2x2
jax: 0.10.0
libtpu: 0.0.40
codegen_flags: <defaults>
</compile_context>

<pallas_src>
import jax
import jax.numpy as jnp
from jax.experimental import pallas as pl
from jax.experimental.pallas import tpu as pltpu

HIDDEN = 256
LANE = 128


def _round_up(x, m):
    return ((x + m - 1) // m) * m


def _mlp_kernel(x_ref, w1_ref, b1_ref, w2_ref, b2_ref, w3_ref, b3_ref, o_ref):
    # x tile: (TB, obs_dim) f32 -> bf16 for the MXU; accumulate in f32.
    # Weights arrive as bf16, biases as f32; bias add + ReLU stay in f32 (VPU-safe on v5e).
    x = x_ref[...].astype(jnp.bfloat16)

    h1 = jnp.dot(x, w1_ref[...], preferred_element_type=jnp.float32) + b1_ref[...]
    h1 = jnp.maximum(h1, 0.0)

    h2 = jnp.dot(h1.astype(jnp.bfloat16), w2_ref[...],
                 preferred_element_type=jnp.float32) + b2_ref[...]
    h2 = jnp.maximum(h2, 0.0)

    q = jnp.dot(h2.astype(jnp.bfloat16), w3_ref[...],
                preferred_element_type=jnp.float32) + b3_ref[...]
    o_ref[...] = q.astype(o_ref.dtype)  # (TB, 128) lane-dense, unmasked store


def init_params(key, obs_dim, hidden, num_actions):
    """Deterministic init mimicking PyTorch nn.Linear U(-1/sqrt(fan_in), 1/sqrt(fan_in)).

    Weights are stored as (in_features, out_features) (transpose of PyTorch's (out, in))
    so the kernel computes y = x @ W + b directly on the MXU.
    """
    keys = jax.random.split(key, 6)

    def linear(kw, kb, fan_in, fan_out):
        bound = 1.0 / jnp.sqrt(jnp.float32(fan_in))
        w = jax.random.uniform(kw, (fan_in, fan_out), jnp.float32, -bound, bound)
        # biases kept 2D (1, fan_out) for clean TPU (sublane, lane) layout
        b = jax.random.uniform(kb, (1, fan_out), jnp.float32, -bound, bound)
        return w, b

    w1, b1 = linear(keys[0], keys[1], obs_dim, hidden)
    w2, b2 = linear(keys[2], keys[3], hidden, hidden)
    w3, b3 = linear(keys[4], keys[5], hidden, num_actions)
    return (w1, b1, w2, b2, w3, b3)


def prepare_params(params):
    """One-time conversion to the kernel-ready layout: bf16 weights, f32 biases,
    final layer zero-padded to a lane-dense (256, 128) / (1, 128)."""
    w1, b1, w2, b2, w3, b3 = params
    num_actions = w3.shape[1]
    n_pad = _round_up(max(num_actions, LANE), LANE)

    w3p = jnp.zeros((w3.shape[0], n_pad), jnp.float32).at[:, :num_actions].set(w3)
    b3p = jnp.zeros((1, n_pad), jnp.float32).at[:, :num_actions].set(b3)

    return (w1.astype(jnp.bfloat16), b1.astype(jnp.float32),
            w2.astype(jnp.bfloat16), b2.astype(jnp.float32),
            w3p.astype(jnp.bfloat16), b3p.astype(jnp.float32))


def mlp_qnetwork_forward(x, prepared_params, num_actions, *, block_batch=512):
    """x: any shape whose trailing dims flatten to obs_dim; returns (B, num_actions) f32."""
    w1, b1, w2, b2, w3, b3 = prepared_params
    obs_dim = w1.shape[0]
    n_pad = w3.shape[1]

    # torch.reshape(x, (-1, obs_dim)) equivalent (glue stays in plain JAX).
    x2d = jnp.reshape(x, (-1, obs_dim)).astype(jnp.float32)
    batch = x2d.shape[0]

    # Batch tile: multiple of 8 sublanes, up to `block_batch` rows per grid step.
    tb = min(block_batch, _round_up(batch, 8))
    padded_b = _round_up(batch, tb)
    if padded_b != batch:
        x2d = jnp.pad(x2d, ((0, padded_b - batch), (0, 0)))

    grid = (padded_b // tb,)
    resident = lambda i: (0, 0)  # weights/biases: same block every step -> stay in VMEM

    flops = 2 * padded_b * (obs_dim * HIDDEN + HIDDEN * HIDDEN + HIDDEN * n_pad)
    bytes_accessed = (
        padded_b * obs_dim * 4                      # x in
        + (w1.size + w2.size + w3.size) * 2         # bf16 weights
        + (b1.size + b2.size + b3.size) * 4         # f32 biases
        + padded_b * n_pad * 4                      # out
    )

    out = pl.pallas_call(
        _mlp_kernel,
        out_shape=jax.ShapeDtypeStruct((padded_b, n_pad), jnp.float32),
        grid=grid,
        in_specs=[
            pl.BlockSpec((tb, obs_dim), lambda i: (i, 0)),
            pl.BlockSpec((obs_dim, HIDDEN), resident),
            pl.BlockSpec((1, HIDDEN), resident),
            pl.BlockSpec((HIDDEN, HIDDEN), resident),
            pl.BlockSpec((1, HIDDEN), resident),
            pl.BlockSpec((HIDDEN, n_pad), resident),
            pl.BlockSpec((1, n_pad), resident),
        ],
        out_specs=pl.BlockSpec((tb, n_pad), lambda i: (i, 0)),
        compiler_params=pltpu.CompilerParams(
            dimension_semantics=("parallel",),   # v7x: split batch grid across both TCs
        ),
        cost_estimate=pl.CostEstimate(
            flops=flops, transcendentals=0, bytes_accessed=bytes_accessed),
    )(x2d, w1, b1, w2, b2, w3, b3)

    # Drop padded batch rows and padded (zero) action columns before any argmax.
    return out[:batch, :num_actions]


def _reference_bf16(x, prepared_params, num_actions):
    """Plain-JAX reference matching the kernel's mixed precision."""
    w1, b1, w2, b2, w3, b3 = prepared_params
    x2d = jnp.reshape(x, (-1, w1.shape[0])).astype(jnp.float32)
    h = jnp.maximum(jnp.dot(x2d.astype(jnp.bfloat16), w1,
                            preferred_element_type=jnp.float32) + b1, 0.0)
    h = jnp.maximum(jnp.dot(h.astype(jnp.bfloat16), w2,
                            preferred_element_type=jnp.float32) + b2, 0.0)
    q = jnp.dot(h.astype(jnp.bfloat16), w3, preferred_element_type=jnp.float32) + b3
    return q[:, :num_actions]


if __name__ == "__main__":
    key = jax.random.PRNGKey(0)
    k_params, k_x = jax.random.split(key)

    obs_dim = 4        # e.g. CartPole-like flat observation (env.observation_space.shape = (4,))
    hidden = HIDDEN
    num_actions = 6    # env.action_space.n
    batch = 8

    params = init_params(k_params, obs_dim, hidden, num_actions)
    prepared = prepare_params(params)
    x = jax.random.normal(k_x, (batch, obs_dim), jnp.float32)

    q_values = mlp_qnetwork_forward(x, prepared, num_actions)
    jax.block_until_ready(q_values)
    assert q_values.shape == (batch, num_actions)

    # Tight check against a precision-matched (bf16-in / f32-acc) reference.
    ref_bf16 = _reference_bf16(x, prepared, num_actions)
    assert jnp.allclose(q_values, ref_bf16, atol=2e-3, rtol=2e-3), (
        jnp.max(jnp.abs(q_values - ref_bf16)))

    # Loose check against the full-f32 PyTorch-equivalent forward.
    w1, b1, w2, b2, w3, b3 = params
    h = jnp.maximum(x @ w1 + b1, 0.0)
    h = jnp.maximum(h @ w2 + b2, 0.0)
    ref_f32 = h @ w3 + b3
    assert jnp.allclose(q_values, ref_f32, atol=5e-2, rtol=5e-2), (
        jnp.max(jnp.abs(q_values - ref_f32)))

    print("KERNEL_OK")
</pallas_src>

<mosaic_0001>
module attributes {stable_mosaic.version = 11 : i64} {
  func.func @_mlp_kernel(%arg0: i32, %arg1: memref<8x4xf32, #tpu.memory_space<vmem>>, %arg2: memref<4x256xbf16, #tpu.memory_space<vmem>>, %arg3: memref<1x256xf32, #tpu.memory_space<vmem>>, %arg4: memref<256x256xbf16, #tpu.memory_space<vmem>>, %arg5: memref<1x256xf32, #tpu.memory_space<vmem>>, %arg6: memref<256x128xbf16, #tpu.memory_space<vmem>>, %arg7: memref<1x128xf32, #tpu.memory_space<vmem>>, %arg8: memref<8x128xf32, #tpu.memory_space<vmem>>) attributes {dimension_semantics = [#tpu.dimension_semantics<parallel>], iteration_bounds = array<i64: 1>, scalar_prefetch = 0 : i64, scratch_operands = 0 : i64, tpu.core_type = #tpu.core_type<tc>, window_params = [{transform_indices = @transform_0, window_bounds = array<i64: 8, 4>}, {pipeline_mode = #tpu.pipeline_mode<synchronous>, transform_indices = @transform_1, window_bounds = array<i64: 4, 256>}, {pipeline_mode = #tpu.pipeline_mode<synchronous>, transform_indices = @transform_2, window_bounds = array<i64: 1, 256>}, {pipeline_mode = #tpu.pipeline_mode<synchronous>, transform_indices = @transform_3, window_bounds = array<i64: 256, 256>}, {pipeline_mode = #tpu.pipeline_mode<synchronous>, transform_indices = @transform_4, window_bounds = array<i64: 1, 256>}, {pipeline_mode = #tpu.pipeline_mode<synchronous>, transform_indices = @transform_5, window_bounds = array<i64: 256, 128>}, {pipeline_mode = #tpu.pipeline_mode<synchronous>, transform_indices = @transform_6, window_bounds = array<i64: 1, 128>}, {transform_indices = @transform_7, window_bounds = array<i64: 8, 128>}]} {
    %c0 = arith.constant 0 : index
    %c0_0 = arith.constant 0 : index
    %0 = vector.load %arg1[%c0, %c0_0] : memref<8x4xf32, #tpu.memory_space<vmem>>, vector<8x4xf32>
    %1 = arith.truncf %0 : vector<8x4xf32> to vector<8x4xbf16>
    %c0_1 = arith.constant 0 : index
    %c0_2 = arith.constant 0 : index
    %2 = vector.load %arg2[%c0_1, %c0_2] : memref<4x256xbf16, #tpu.memory_space<vmem>>, vector<4x256xbf16>
    %cst = arith.constant dense<0.000000e+00> : vector<8x256xf32>
    %3 = tpu.matmul %1, %2, %cst {dimension_numbers = #tpu.dot_dimension_numbers<[1], [0], [0], [1], [0, 0, 1, 1], [], []>} : vector<8x4xbf16>, vector<4x256xbf16>, vector<8x256xf32> -> vector<8x256xf32>
    %c0_3 = arith.constant 0 : index
    %c0_4 = arith.constant 0 : index
    %4 = vector.load %arg3[%c0_3, %c0_4] : memref<1x256xf32, #tpu.memory_space<vmem>>, vector<1x256xf32>
    %5 = vector.broadcast %4 : vector<1x256xf32> to vector<8x256xf32>
    %6 = arith.addf %3, %5 : vector<8x256xf32>
    %cst_5 = arith.constant 0.000000e+00 : f32
    %7 = vector.broadcast %cst_5 : f32 to vector<8x256xf32>
    %8 = arith.maximumf %6, %7 : vector<8x256xf32>
    %9 = arith.truncf %8 : vector<8x256xf32> to vector<8x256xbf16>
    %c0_6 = arith.constant 0 : index
    %c0_7 = arith.constant 0 : index
    %10 = vector.load %arg4[%c0_6, %c0_7] : memref<256x256xbf16, #tpu.memory_space<vmem>>, vector<256x256xbf16>
    %cst_8 = arith.constant dense<0.000000e+00> : vector<8x256xf32>
    %11 = tpu.matmul %9, %10, %cst_8 {dimension_numbers = #tpu.dot_dimension_numbers<[1], [0], [0], [1], [0, 0, 1, 1], [], []>} : vector<8x256xbf16>, vector<256x256xbf16>, vector<8x256xf32> -> vector<8x256xf32>
    %c0_9 = arith.constant 0 : index
    %c0_10 = arith.constant 0 : index
    %12 = vector.load %arg5[%c0_9, %c0_10] : memref<1x256xf32, #tpu.memory_space<vmem>>, vector<1x256xf32>
    %13 = vector.broadcast %12 : vector<1x256xf32> to vector<8x256xf32>
    %14 = arith.addf %11, %13 : vector<8x256xf32>
    %cst_11 = arith.constant 0.000000e+00 : f32
    %15 = vector.broadcast %cst_11 : f32 to vector<8x256xf32>
    %16 = arith.maximumf %14, %15 : vector<8x256xf32>
    %17 = arith.truncf %16 : vector<8x256xf32> to vector<8x256xbf16>
    %c0_12 = arith.constant 0 : index
    %c0_13 = arith.constant 0 : index
    %18 = vector.load %arg6[%c0_12, %c0_13] : memref<256x128xbf16, #tpu.memory_space<vmem>>, vector<256x128xbf16>
    %cst_14 = arith.constant dense<0.000000e+00> : vector<8x128xf32>
    %19 = tpu.matmul %17, %18, %cst_14 {dimension_numbers = #tpu.dot_dimension_numbers<[1], [0], [0], [1], [0, 0, 1, 1], [], []>} : vector<8x256xbf16>, vector<256x128xbf16>, vector<8x128xf32> -> vector<8x128xf32>
    %c0_15 = arith.constant 0 : index
    %c0_16 = arith.constant 0 : index
    %20 = vector.load %arg7[%c0_15, %c0_16] : memref<1x128xf32, #tpu.memory_space<vmem>>, vector<1x128xf32>
    %21 = vector.broadcast %20 : vector<1x128xf32> to vector<8x128xf32>
    %22 = arith.addf %19, %21 : vector<8x128xf32>
    %c0_17 = arith.constant 0 : index
    %c0_18 = arith.constant 0 : index
    %23 = vector.load %arg8[%c0_17, %c0_18] : memref<8x128xf32, #tpu.memory_space<vmem>>, vector<8x128xf32>
    tpu.vector_store %arg8[%c0_17, %c0_18], %22 {strides = array<i32>} : memref<8x128xf32, #tpu.memory_space<vmem>>, vector<8x128xf32>,
    return
  }
  func.func @transform_0(%arg0: i32) -> (i32, i32) {
    %c0_i32 = arith.constant 0 : i32
    %c0_i32_0 = arith.constant 0 : i32
    return %arg0, %c0_i32 : i32, i32
  }
  func.func @transform_1(%arg0: i32) -> (i32, i32) {
    %c0_i32 = arith.constant 0 : i32
    %c0_i32_0 = arith.constant 0 : i32
    %c0_i32_1 = arith.constant 0 : i32
    return %c0_i32, %c0_i32_0 : i32, i32
  }
  func.func @transform_2(%arg0: i32) -> (i32, i32) {
    %c0_i32 = arith.constant 0 : i32
    %c0_i32_0 = arith.constant 0 : i32
    %c0_i32_1 = arith.constant 0 : i32
    return %c0_i32, %c0_i32_0 : i32, i32
  }
  func.func @transform_3(%arg0: i32) -> (i32, i32) {
    %c0_i32 = arith.constant 0 : i32
    %c0_i32_0 = arith.constant 0 : i32
    %c0_i32_1 = arith.constant 0 : i32
    return %c0_i32, %c0_i32_0 : i32, i32
  }
  func.func @transform_4(%arg0: i32) -> (i32, i32) {
    %c0_i32 = arith.constant 0 : i32
    %c0_i32_0 = arith.constant 0 : i32
    %c0_i32_1 = arith.constant 0 : i32
    return %c0_i32, %c0_i32_0 : i32, i32
  }
  func.func @transform_5(%arg0: i32) -> (i32, i32) {
    %c0_i32 = arith.constant 0 : i32
    %c0_i32_0 = arith.constant 0 : i32
    %c0_i32_1 = arith.constant 0 : i32
    return %c0_i32, %c0_i32_0 : i32, i32
  }
  func.func @transform_6(%arg0: i32) -> (i32, i32) {
    %c0_i32 = arith.constant 0 : i32
    %c0_i32_0 = arith.constant 0 : i32
    %c0_i32_1 = arith.constant 0 : i32
    return %c0_i32, %c0_i32_0 : i32, i32
  }
  func.func @transform_7(%arg0: i32) -> (i32, i32) {
    %c0_i32 = arith.constant 0 : i32
    %c0_i32_0 = arith.constant 0 : i32
    return %arg0, %c0_i32 : i32, i32
  }
}

</mosaic_0001>

<bundles_post_ra>
// kernel: tpu_custom_call.1
= control target key start
LH: loop header
LB: loop body
LE: loop exit
PB: predicated region body
PF: predicated region fallthrough
CT: control target
= control target key end

     0   :  { %12 = vsyncpa [#allocation3], 0  ;;  %s946_s0 = inlined_call_operand.vmem [shape: f32[8,4], index: 0, kind: input, shape index: {}]   ;;  %s947_s1 = inlined_call_operand.vmem [shape: bf16[4,256], index: 1, kind: input, shape index: {}]   ;;  %s948_s2 = inlined_call_operand.vmem [shape: f32[1,256], index: 2, kind: input, shape index: {}]   ;;  %s949_s3 = inlined_call_operand.hbm [shape: bf16[256,256], index: 3, kind: input, shape index: {}]   ;;  %s950_s4 = inlined_call_operand.vmem [shape: f32[1,256], index: 4, kind: input, shape index: {}]   ;;  %s951_s5 = inlined_call_operand.hbm [shape: bf16[256,128], index: 5, kind: input, shape index: {}]   ;;  %s952_s6 = inlined_call_operand.vmem [shape: f32[1,128], index: 6, kind: input, shape index: {}]   ;;  %s953_s7 = inlined_call_operand.hbm [shape: f32[8,128], index: 7, kind: output, shape index: {}]  }
   0x1   :  { %13 = vsyncpa [#allocation6], 0 }
   0x2   :  { %14 = vsyncpa [#allocation4], 0  ;;  %s25_s26 = sshll.u32 %s949_s3, 4  ;;  %s871_s27 = smov [#allocation2]   ;;  %s26_s26 = int_to_ptr.hbm [resolvable:$true] %s25_s26 }
   0x3   :  { %s27_s28 = sshll.u32 %s871_s27, 4  ;;  %s40_s8 = sshll.u32 %s951_s5, 4  ;;  %s28_s28 = int_to_ptr.vmem [resolvable:$true] %s27_s28  ;;  %s41_s8 = int_to_ptr.hbm [resolvable:$true] %s40_s8 }
   0x4   :  { %s872_s9 = smov 128   ;;  %s873_s10 = smov 8  }
   0x5   :  { %33 = dma.hbm_to_vmem [thread:$0]  %s26_s26, 4096, %s28_s28, [#allocation3], %s872_s9, %s872_s9, %s873_s10  }
   0x6   :  { %s874_s11 = smov [#allocation5]   ;;  %s875_s13 = smov 64  }
   0x7   :  { %s42_s12 = sshll.u32 %s874_s11, 4  ;;  %s876_s14 = smov 4   ;;  %s43_s12 = int_to_ptr.vmem [resolvable:$true] %s42_s12 }
   0x8   :  { %48 = dma.hbm_to_vmem [thread:$0]  %s41_s8, 2048, %s43_s12, [#allocation6], %s875_s13, %s875_s13, %s876_s14  }
   0x9   :  { %865 = dma.done.wait [#allocation3], 4096  }
   0xa   :  { %866 = vsyncadd [#allocation3], 4294963200 }
   0xb   :  { %867 = dma.done.wait [#allocation6], 2048  }
   0xc   :  { %868 = vsyncadd [#allocation6], 4294965248  ;;  %v62_v0 = vld [vmem:[%s947_s1] sm:$0xf]  ;;  %v603_v1 = vld [vmem:[#allocation2 + $0x70] sm:$0xf] }
   0xd   :  { %70 = vst [vmem:[#allocation1] ss:$4 sm:$0xff] %v62_v0  ;;  %v752_v2 = vld [vmem:[#allocation2 + $0x74] sm:$0xf0]  ;;  %v667_v3 = vld [vmem:[#allocation2 + $0xf0] sm:$0xf] }
   0xe   :  { %v604_v4 = vor.u32 %v752_v2, %v603_v1  ;;  %v768_v5 = vld [vmem:[#allocation2 + $0xf4] sm:$0xf0]  ;;  %v751_v6 = vld [vmem:[#allocation2 + $0x74] sm:$0xf]  ;;  %v605_v7 = vld [vmem:[#allocation2 + $0x78] sm:$0xf0] }
   0xf   :  { %v668_v8 = vor.u32 %v768_v5, %v667_v3  ;;  %v767_v9 = vld [vmem:[#allocation2 + $0xf4] sm:$0xf]  ;;  %v669_v10 = vld [vmem:[#allocation2 + $0xf8] sm:$0xf0]  ;;  %v595_v11 = vld [vmem:[#allocation2 + $0x60] sm:$0xf]  ;;  %v608_v23 = vor.u32 %v751_v6, %v605_v7 }
  0x10   :  { %310 = vmatpush.bf16.msra.mxu2 %v604_v4  ;;  %v750_v12 = vld [vmem:[#allocation2 + $0x64] sm:$0xf0]  ;;  %v659_v13 = vld [vmem:[#allocation2 + $0xe0] sm:$0xf]  ;;  %vm77_vm0 = vcmask 1041408   ;;  %v60_v15 = vld [vmem:[%s946_s0] sm:$0xff]  ;;  %v672_v24 = vor.u32 %v767_v9, %v669_v10 }
  0x11   :  { %v766_v14 = vld [vmem:[#allocation2 + $0xe4] sm:$0xf0]  ;;  %323 = vmatpush.bf16.msra.mxu3 %v668_v8  ;;  %v596_v16 = vor.u32 %v750_v12, %v595_v11  ;;  %v749_v18 = vld [vmem:[#allocation2 + $0x64] sm:$0xf]  ;;  %v597_v19 = vld [vmem:[#allocation2 + $0x68] sm:$0xf0]  ;;  %v61_v33 = vpack.c.bf16 %v60_v15, %v60_v15 }
  0x12   :  { %v660_v17 = vor.u32 %v766_v14, %v659_v13  ;;  %v765_v20 = vld [vmem:[#allocation2 + $0xe4] sm:$0xf]  ;;  %v587_v21 = vld [vmem:[#allocation2 + $0x50] sm:$0xf]  ;;  %v748_v22 = vld [vmem:[#allocation2 + $0x54] sm:$0xf0]  ;;  %v600_v37 = vor.u32 %v749_v18, %v597_v19 }
  0x13   :  { %v661_v25 = vld [vmem:[#allocation2 + $0xe8] sm:$0xf0]  ;;  %v651_v26 = vld [vmem:[#allocation2 + $0xd0] sm:$0xf]  ;;  %v764_v27 = vld [vmem:[#allocation2 + $0xd4] sm:$0xf0]  ;;  %v588_v30 = vor.u32 %v748_v22, %v587_v21 }
  0x14   :  { %v71_v28 = vld.sshfl [vmem:[#allocation1] sm:$0xff pattern:$0x73625140]  ;;  %v72_v29 = vld.sshfl [vmem:[#allocation1 + $0x8] sm:$0xff pattern:$0x73625140]  ;;  %311 = vmatpush.bf16.msra.mxu2 %v596_v16  ;;  %v652_v34 = vor.u32 %v764_v27, %v651_v26  ;;  %v664_v38 = vor.u32 %v765_v20, %v661_v25 }
  0x15   :  { %v78_v31 = vsel %vm77_vm0, %v71_v28, 0  ;;  %v80_v32 = vsel %vm77_vm0, %v72_v29, 0  ;;  %324 = vmatpush.bf16.msra.mxu3 %v660_v17  ;;  %vm73_vm1 = vcmask 31744   ;;  %v579_v35 = vld [vmem:[#allocation2 + $0x40] sm:$0xf]  ;;  %s877_s19 = smov [#allocation7]  }
  0x16   :  { %89 = vmatpush.bf16.msra.mxu0 %v78_v31  ;;  %102 = vmatpush.bf16.msra.mxu1 %v80_v32  ;;  %v746_v36 = vld [vmem:[#allocation2 + $0x44] sm:$0xf0]  ;;  %v747_v39 = vld [vmem:[#allocation2 + $0x54] sm:$0xf]  ;;  %v643_v40 = vld [vmem:[#allocation2 + $0xc0] sm:$0xf] }
  0x17   :  { %v762_v41 = vld [vmem:[#allocation2 + $0xc4] sm:$0xf0]  ;;  %v589_v42 = vld [vmem:[#allocation2 + $0x58] sm:$0xf0]  ;;  %v763_v43 = vld [vmem:[#allocation2 + $0xd4] sm:$0xf]  ;;  %v580_v45 = vor.u32 %v746_v36, %v579_v35 }
  0x18   :  { %312 = vmatpush.bf16.msra.mxu2 %v588_v30  ;;  %v653_v44 = vld [vmem:[#allocation2 + $0xd8] sm:$0xf0]  ;;  %v571_v46 = vld [vmem:[#allocation2 + $0x30] sm:$0xf]  ;;  %v744_v47 = vld [vmem:[#allocation2 + $0x34] sm:$0xf0]  ;;  %v644_v48 = vor.u32 %v762_v41, %v643_v40  ;;  %v592_v49 = vor.u32 %v747_v39, %v589_v42 }
  0x19   :  { %543 = vmatmul.msk.bf16.vlgmr.msra.gmra.mxu0 %vm73_vm1, %v61_v33  ;;  %544 = vmatmul.msk.bf16.vlgmr.msra.gmra.mxu1 %vm73_vm1, %v61_v33  ;;  %v656_v50 = vor.u32 %v763_v43, %v653_v44  ;;  %v745_v51 = vld [vmem:[#allocation2 + $0x44] sm:$0xf]  ;;  %v635_v52 = vld [vmem:[#allocation2 + $0xb0] sm:$0xf]  ;;  %v760_v53 = vld [vmem:[#allocation2 + $0xb4] sm:$0xf0]  ;;  %v572_v57 = vor.u32 %v744_v47, %v571_v46 }
  0x1a   :  { %336 = vmatpush.bf16.msrb.mxu0 %v608_v23  ;;  %349 = vmatpush.bf16.msrb.mxu1 %v672_v24  ;;  %v581_v54 = vld [vmem:[#allocation2 + $0x48] sm:$0xf0]  ;;  %v761_v55 = vld [vmem:[#allocation2 + $0xc4] sm:$0xf]  ;;  %v563_v58 = vld [vmem:[#allocation2 + $0x20] sm:$0xf]  ;;  %v636_v60 = vor.u32 %v760_v53, %v635_v52 }
  0x1b   :  { %325 = vmatpush.bf16.msra.mxu3 %v652_v34  ;;  %v645_v56 = vld [vmem:[#allocation2 + $0xc8] sm:$0xf0]  ;;  %v742_v59 = vld [vmem:[#allocation2 + $0x24] sm:$0xf0]  ;;  %v584_v61 = vor.u32 %v745_v51, %v581_v54  ;;  %v743_v63 = vld [vmem:[#allocation2 + $0x34] sm:$0xf] }
  0x1c   :  { %313 = vmatpush.bf16.msra.mxu2 %v580_v45  ;;  %v648_v62 = vor.u32 %v761_v55, %v645_v56  ;;  %v627_v0 = vld [vmem:[#allocation2 + $0xa0] sm:$0xf]  ;;  %v758_v1 = vld [vmem:[#allocation2 + $0xa4] sm:$0xf0]  ;;  %v573_v2 = vld [vmem:[#allocation2 + $0x38] sm:$0xf0]  ;;  %v564_v5 = vor.u32 %v742_v59, %v563_v58 }
  0x1d   :  { %v759_v3 = vld [vmem:[#allocation2 + $0xb4] sm:$0xf]  ;;  %v637_v4 = vld [vmem:[#allocation2 + $0xb8] sm:$0xf0]  ;;  %v628_v6 = vor.u32 %v758_v1, %v627_v0  ;;  %v576_v7 = vor.u32 %v743_v63, %v573_v2  ;;  %v741_v9 = vld [vmem:[#allocation2 + $0x24] sm:$0xf] }
  0x1e   :  { %337 = vmatpush.bf16.msrb.mxu0 %v600_v37  ;;  %350 = vmatpush.bf16.msrb.mxu1 %v664_v38  ;;  %v640_v8 = vor.u32 %v759_v3, %v637_v4  ;;  %v565_v10 = vld [vmem:[#allocation2 + $0x28] sm:$0xf0]  ;;  %v757_v11 = vld [vmem:[#allocation2 + $0xa4] sm:$0xf]  ;;  %v555_v15 = vld [vmem:[#allocation2 + $0x10] sm:$0xf] }
  0x1f   :  { %326 = vmatpush.bf16.msra.mxu3 %v644_v48  ;;  %v629_v12 = vld [vmem:[#allocation2 + $0xa8] sm:$0xf0]  ;;  %v568_v13 = vor.u32 %v741_v9, %v565_v10  ;;  %v740_v16 = vld [vmem:[#allocation2 + $0x14] sm:$0xf0]  ;;  %v619_v17 = vld [vmem:[#allocation2 + $0x90] sm:$0xf] }
  0x20   :  { %314 = vmatpush.bf16.msra.mxu2 %v572_v57  ;;  %v632_v14 = vor.u32 %v757_v11, %v629_v12  ;;  %v556_v18 = vor.u32 %v740_v16, %v555_v15  ;;  %v756_v19 = vld [vmem:[#allocation2 + $0x94] sm:$0xf0]  ;;  %v739_v20 = vld [vmem:[#allocation2 + $0x14] sm:$0xf]  ;;  %v557_v21 = vld [vmem:[#allocation2 + $0x18] sm:$0xf0] }
  0x21   :  { %v620_v22 = vor.u32 %v756_v19, %v619_v17  ;;  %v560_v23 = vor.u32 %v739_v20, %v557_v21  ;;  %v755_v24 = vld [vmem:[#allocation2 + $0x94] sm:$0xf]  ;;  %v621_v25 = vld [vmem:[#allocation2 + $0x98] sm:$0xf0]  ;;  %v547_v27 = vld [vmem:[#allocation2] sm:$0xf] }
  0x22   :  { %338 = vmatpush.bf16.msrb.mxu0 %v592_v49  ;;  %351 = vmatpush.bf16.msrb.mxu1 %v656_v50  ;;  %v624_v26 = vor.u32 %v755_v24, %v621_v25  ;;  %v738_v28 = vld [vmem:[#allocation2 + $0x4] sm:$0xf0]  ;;  %v611_v29 = vld [vmem:[#allocation2 + $0x80] sm:$0xf]  ;;  %v737_v32 = vld [vmem:[#allocation2 + $0x4] sm:$0xf] }
  0x23   :  { %327 = vmatpush.bf16.msra.mxu3 %v636_v60  ;;  %v548_v30 = vor.u32 %v738_v28, %v547_v27  ;;  %v754_v31 = vld [vmem:[#allocation2 + $0x84] sm:$0xf0]  ;;  %v549_v33 = vld [vmem:[#allocation2 + $0x8] sm:$0xf0]  ;;  %v753_v36 = vld [vmem:[#allocation2 + $0x84] sm:$0xf] }
  0x24   :  { %315 = vmatpush.bf16.msra.mxu2 %v564_v5  ;;  %v612_v34 = vor.u32 %v754_v31, %v611_v29  ;;  %v552_v35 = vor.u32 %v737_v32, %v549_v33  ;;  %v613_v37 = vld [vmem:[#allocation2 + $0x88] sm:$0xf0]  ;;  %v784_v39 = vld [vmem:[#allocation5 + $0x78] sm:$0xff]  ;;  %v783_v41 = vld [vmem:[#allocation5 + $0x70] sm:$0xff]  ;;  %s530_s20 = sshll.u32 %s877_s19, 4  ;;  %s532_s23 = sshll.u32 %s953_s7, 4  ;;  %s531_s20 = int_to_ptr.vmem [resolvable:$true] %s530_s20  ;;  %s533_s23 = int_to_ptr.hbm [resolvable:$true] %s532_s23 }
  0x25   :  { %v616_v38 = vor.u32 %v753_v36, %v613_v37  ;;  %v776_v40 = vld [vmem:[#allocation5 + $0x38] sm:$0xff]  ;;  %v775_v42 = vld [vmem:[#allocation5 + $0x30] sm:$0xff]  ;;  %v782_v43 = vld [vmem:[#allocation5 + $0x68] sm:$0xff] }
  0x26   :  { %339 = vmatpush.bf16.msrb.mxu0 %v584_v61  ;;  %352 = vmatpush.bf16.msrb.mxu1 %v648_v62  ;;  %v774_v44 = vld [vmem:[#allocation5 + $0x28] sm:$0xff]  ;;  %v781_v45 = vld [vmem:[#allocation5 + $0x60] sm:$0xff]  ;;  %v780_v47 = vld [vmem:[#allocation5 + $0x58] sm:$0xff] }
  0x27   :  { %328 = vmatpush.bf16.msra.mxu3 %v628_v6  ;;  %v773_v46 = vld [vmem:[#allocation5 + $0x20] sm:$0xff]  ;;  %v63_v48 = vld [vmem:[%s948_s2] sm:$0x3]  ;;  %v779_v49 = vld [vmem:[#allocation5 + $0x50] sm:$0xff] }
  0x28   :  { %316 = vmatpush.bf16.msra.mxu2 %v556_v18  ;;  %v65_v50 = vperm.slane %v63_v48, 0  ;;  %v66_v51 = vperm.slane %v63_v48, 1  ;;  %v772_v62 = vld [vmem:[#allocation5 + $0x18] sm:$0xff]  ;;  %v778_v63 = vld [vmem:[#allocation5 + $0x48] sm:$0xff]  ;;  %v771_v0 = vld [vmem:[#allocation5 + $0x10] sm:$0xff] }
  0x29   :  { %v777_v1 = vld [vmem:[#allocation5 + $0x40] sm:$0xff]  ;;  %v770_v2 = vld [vmem:[#allocation5 + $0x8] sm:$0xff]  ;;  %v144_v4 = vld [vmem:[%s950_s4] sm:$0x3] }
  0x2a   :  { %340 = vmatpush.bf16.msrb.mxu0 %v576_v7  ;;  %353 = vmatpush.bf16.msrb.mxu1 %v640_v8  ;;  %v769_v3 = vld [vmem:[#allocation5] sm:$0xff]  ;;  %v147_v5 = vperm.slane %v144_v4, 1  ;;  %v146_v9 = vperm.slane %v144_v4, 0  ;;  %v792_v24 = vld [vmem:[%s952_s6] ss:$0 sm:$0xff] }
  0x2b   :  { %329 = vmatpush.bf16.msra.mxu3 %v620_v22 }
  0x2c   :  { %317 = vmatpush.bf16.msra.mxu2 %v548_v30 }
  0x2e   :  { %341 = vmatpush.bf16.msrb.mxu0 %v568_v13  ;;  %354 = vmatpush.bf16.msrb.mxu1 %v632_v14 }
  0x2f   :  { %330 = vmatpush.bf16.msra.mxu3 %v612_v34 }
  0x30   :  { %498 = vmatpush.bf16.msrb.mxu2 %v776_v40 }
  0x32   :  { %342 = vmatpush.bf16.msrb.mxu0 %v560_v23  ;;  %355 = vmatpush.bf16.msrb.mxu1 %v624_v26 }
  0x33   :  { %511 = vmatpush.bf16.msrb.mxu3 %v784_v39 }
  0x34   :  { %499 = vmatpush.bf16.msrb.mxu2 %v775_v42 }
  0x36   :  { %343 = vmatpush.bf16.msrb.mxu0 %v552_v35  ;;  %356 = vmatpush.bf16.msrb.mxu1 %v616_v38 }
  0x37   :  { %512 = vmatpush.bf16.msrb.mxu3 %v783_v41 }
  0x38   :  { %500 = vmatpush.bf16.msrb.mxu2 %v774_v44 }
  0x3b   :  { %513 = vmatpush.bf16.msrb.mxu3 %v782_v43 }
  0x3c   :  { %501 = vmatpush.bf16.msrb.mxu2 %v773_v46 }
  0x3f   :  { %514 = vmatpush.bf16.msrb.mxu3 %v781_v45 }
  0x40   :  { %502 = vmatpush.bf16.msrb.mxu2 %v772_v62 }
  0x43   :  { %515 = vmatpush.bf16.msrb.mxu3 %v780_v47 }
  0x44   :  { %503 = vmatpush.bf16.msrb.mxu2 %v771_v0 }
  0x47   :  { %516 = vmatpush.bf16.msrb.mxu3 %v779_v49 }
  0x48   :  { %504 = vmatpush.bf16.msrb.mxu2 %v770_v2 }
  0x4b   :  { %517 = vmatpush.bf16.msrb.mxu3 %v778_v63 }
  0x4c   :  { %505 = vmatpush.bf16.msrb.mxu2 %v769_v3 }
  0x4f   :  { %518 = vmatpush.bf16.msrb.mxu3 %v777_v1 }
  0x96   :  { %v91_v52 = vpop.f32.mrf.mxu0  ;;  %v104_v53 = vpop.f32.mrf.mxu1 }
  0x97   :  { %v92_v54 = vadd.f32 %v91_v52, %v65_v50  ;;  %v105_v55 = vadd.f32 %v104_v53, %v66_v51 }
  0x99   :  { %v108_v56 = vmax.f32 %v92_v54, 0.0  ;;  %v109_v57 = vmax.f32 %v105_v55, 0.0 }
  0x9b   :  { %v110_v58 = vpack.c.bf16 %v108_v56, %v108_v56  ;;  %v111_v59 = vpack.c.bf16 %v109_v57, %v109_v57 }
  0x9d   :  { %318 = vmatmul.bf16.vlgmr.msra.gmra.mxu2 %v110_v58  ;;  %331 = vmatmul.bf16.vlgmr.msra.gmra.mxu3 %v111_v59 }
  0x9e   :  { %344 = vmatmul.bf16.vlgmr.msrb.gmra.mxu0 %v110_v58  ;;  %357 = vmatmul.bf16.vlgmr.msrb.gmra.mxu1 %v111_v59  ;;  %v93_v60 = vpop.f32.mrf.mxu0  ;;  %v106_v61 = vpop.f32.mrf.mxu1 }
 0x11b   :  { %v345_v6 = vpop.f32.mrf.mxu0  ;;  %v358_v7 = vpop.f32.mrf.mxu1 }
 0x11c   :  { %v346_v8 = vadd.f32 %v345_v6, %v147_v5 }
 0x11e   :  { %v359_v10 = vadd.f32 %v358_v7, %v346_v8 }
 0x120   :  { %v363_v11 = vmax.f32 %v359_v10, 0.0  ;;  %v319_v12 = vpop.f32.mrf.mxu2  ;;  %v332_v13 = vpop.f32.mrf.mxu3 }
 0x121   :  { %v320_v14 = vadd.f32 %v319_v12, %v146_v9 }
 0x122   :  { %v365_v15 = vpack.c.bf16 %v363_v11, %v363_v11 }
 0x123   :  { %v333_v16 = vadd.f32 %v332_v13, %v320_v14  ;;  %v347_v17 = vpop.f32.mrf.mxu0  ;;  %v360_v18 = vpop.f32.mrf.mxu1 }
 0x124   :  { %519 = vmatmul.bf16.vlgmr.msrb.gmra.mxu3 %v365_v15 }
 0x125   :  { %v362_v19 = vmax.f32 %v333_v16, 0.0 }
 0x127   :  { %v364_v20 = vpack.c.bf16 %v362_v19, %v362_v19 }
 0x128   :  { %v321_v21 = vpop.f32.mrf.mxu2  ;;  %v334_v22 = vpop.f32.mrf.mxu3 }
 0x129   :  { %506 = vmatmul.bf16.vlgmr.msrb.gmra.mxu2 %v364_v20 }
 0x1a7   :  { %v520_v23 = vpop.f32.mrf.mxu3 }
 0x1ac   :  { %v507_v25 = vpop.f32.mrf.mxu2 }
 0x1ad   :  { %v508_v26 = vadd.f32 %v792_v24, %v507_v25 }
 0x1af   :  { %v521_v27 = vadd.f32 %v520_v23, %v508_v26  ;;  %v522_v28 = vpop.f32.mrf.mxu3 }
 0x1b1   :  { %524 = vst [vmem:[#allocation7] sm:$0xff] %v521_v27 }
 0x1b2   :  { %535 = dma.vmem_to_hbm [thread:$0]  %s531_s20, 128, %s533_s23, [#allocation4]  }
 0x1b4   :  { %v509_v29 = vpop.f32.mrf.mxu2 }
 0x1b5   :  { %869 = dma.done.wait [#allocation4], 128  }
 0x1b6   :  { %870 = vsyncadd [#allocation4], 4294967168 }
 0x1b7   :  { %540 = vsyncpa [#allocation3], 1 }
 0x1b8   :  { %541 = vsyncpa [#allocation6], 1 }
 0x1b9   :  { %542 = vsyncpa [#allocation4], 1 }

</bundles_post_ra>
